<compile_context>
chip_gen: v5e
topology: v5e:2x2
jax: 0.10.0
libtpu: 0.0.40
codegen_flags: <defaults>
</compile_context>

<pallas_src>
import functools

import jax
import jax.numpy as jnp
from jax import lax
from jax.experimental import pallas as pl
from jax.experimental.pallas import tpu as pltpu

_LANE = 128
_SUBLANE = 8


def _round_up(x, m):
    return (x + m - 1) // m * m


def _ceil_div(a, b):
    return -(-a // b)


def _correlation_cost_kernel(left_ref, right_ref, out_ref, *,
                             max_disp, c_chunk, d_grp, widen_to_f32):
    """For one (batch, h-tile) block:
       out[i, h, w] = mean_c(left[c, h, w] * right[c, h, w - i]),  zero for w < i
       (exactly the PyTorch loop semantics).

    Loop order: disparity groups (outer) -> channel chunks -> disparities in
    the group (inner).  Each loaded (c_chunk, th, w) pair of chunks feeds all
    d_grp disparities of the group, so VMEM loads are amortized d_grp x."""
    c, th, w = left_ref.shape
    col = lax.broadcasted_iota(jnp.int32, (th, w), 1)   # hoisted, reused by all i
    inv_c = jnp.float32(1.0 / c)

    for d0 in range(0, max_disp, d_grp):
        nd = min(d_grp, max_disp - d0)
        # Per-disparity f32 accumulators for this group (small: nd * th * w).
        accs = [jnp.zeros((th, w), jnp.float32) for _ in range(nd)]

        for cc in range(0, c, c_chunk):
            ck = min(c_chunk, c - cc)
            l = left_ref[pl.ds(cc, ck), :, :]
            r = right_ref[pl.ds(cc, ck), :, :]
            if widen_to_f32:
                # One widen per chunk (reused across nd disparities); use for
                # bf16 inputs on v5e where there is no native bf16 VPU path.
                l = l.astype(jnp.float32)
                r = r.astype(jnp.float32)
            if d0 > 0:
                # Static base roll for the group (XLU).
                r = pltpu.roll(r, shift=d0, axis=2)
            for j in range(nd):
                if j > 0:
                    # Incremental roll by 1 reuses the already-rolled chunk.
                    r = pltpu.roll(r, shift=1, axis=2)
                # Multiply in the chunk dtype; accumulate the channel sum in f32.
                accs[j] = accs[j] + jnp.sum(l * r, axis=0, dtype=jnp.float32)

        for j in range(nd):
            i = d0 + j
            # Mask kills the wrap-around columns w < i (matches PyTorch's zeros).
            cost = jnp.where(col >= i, accs[j] * inv_c, jnp.float32(0.0))
            out_ref[i, :, :] = cost.astype(out_ref.dtype)


def _per_row_vmem_bytes(c, w_pad, max_disp, itemsize, c_chunk, d_grp):
    """Estimated VMEM bytes per H row: double-buffered input blocks
    (2 inputs x 2 bufs), double-buffered output block, plus in-kernel
    temporaries (widened l/r chunks, group accumulators, iota/cost)."""
    blocks = itemsize * w_pad * (4 * c + 2 * max_disp)
    temps = 4 * w_pad * (2 * c_chunk + d_grp + 2)
    return blocks + temps


def cost_volume_correlation(left_feature, right_feature, max_disp, *,
                            h_tile=None, c_chunk=None, d_grp=8,
                            widen_to_f32=False, vmem_limit_bytes=None):
    """Pallas implementation of CostVolume(max_disp, 'correlation').forward."""
    b, c, h, w = left_feature.shape
    assert right_feature.shape == (b, c, h, w)
    dtype = left_feature.dtype
    itemsize = jnp.dtype(dtype).itemsize

    # ---- Generation-aware VMEM budget ------------------------------------
    try:
        vmem_cap = int(pltpu.get_tpu_info().vmem_capacity_bytes)
        if vmem_cap <= 0:
            vmem_cap = 64 << 20
    except Exception:
        vmem_cap = 64 << 20  # conservative: fits v7x as well as v5e/v6e
    if vmem_limit_bytes is None:
        # ~56 MiB on v7x (64 MiB physical), ~100 MiB on v5e/v6e (128 MiB).
        vmem_limit_bytes = min(max(vmem_cap - (8 << 20), 32 << 20), 100 << 20)

    # ---- Tiling parameters -------------------------------------------------
    if c_chunk is None:
        c_chunk = 16
    c_chunk = max(1, min(c_chunk, c))
    d_grp = max(1, min(d_grp, max_disp))

    # Lane-dense last dim: pad W to a multiple of 128 (unmasked full-lane
    # stores); padded columns/rows are sliced off at the end.
    w_pad = _round_up(w, _LANE)

    per_row = _per_row_vmem_bytes(c, w_pad, max_disp, itemsize, c_chunk, d_grp)
    # If even an 8-row block does not fit the default limit, raise the limit
    # toward physical capacity rather than failing to lower.
    min_needed = per_row * _SUBLANE + (2 << 20)
    if min_needed > vmem_limit_bytes:
        vmem_limit_bytes = min(vmem_cap, min_needed)
        # TODO(synk): if it still doesn't fit (huge c*w or max_disp*w), split
        # channels / disparities onto extra grid axes instead of one block.

    if h_tile is None:
        budget = (vmem_limit_bytes * 3) // 4          # headroom for compiler temps
        th_max = budget // max(per_row, 1)
        th_max = max(_SUBLANE, (th_max // _SUBLANE) * _SUBLANE)
        th_max = min(th_max, 512, _round_up(h, _SUBLANE))
        # Pick the number of H tiles first, then size the tile to minimize
        # padding (e.g. h=375 -> 2 tiles of 192, not 2 tiles of 256).
        n_h = max(1, _ceil_div(h, th_max))
        max_n_h = max(1, _ceil_div(h, _SUBLANE))
        # v7x megacore: make sure both TensorCores get at least one grid step.
        while b * n_h < 2 and n_h < max_n_h:
            n_h += 1
        h_tile = _round_up(_ceil_div(h, n_h), _SUBLANE)
    h_tile = max(_SUBLANE, _round_up(h_tile, _SUBLANE))
    n_h = _ceil_div(h, h_tile)
    h_pad = n_h * h_tile

    if (w_pad != w) or (h_pad != h):
        pad = ((0, 0), (0, 0), (0, h_pad - h), (0, w_pad - w))
        left_feature = jnp.pad(left_feature, pad)
        right_feature = jnp.pad(right_feature, pad)

    kernel = functools.partial(_correlation_cost_kernel, max_disp=max_disp,
                               c_chunk=c_chunk, d_grp=d_grp,
                               widen_to_f32=widen_to_f32)
    out = pl.pallas_call(
        kernel,
        out_shape=jax.ShapeDtypeStruct((b, max_disp, h_pad, w_pad), dtype),
        grid=(b, n_h),
        in_specs=[
            pl.BlockSpec((None, c, h_tile, w_pad), lambda bi, hi: (bi, 0, hi, 0)),
            pl.BlockSpec((None, c, h_tile, w_pad), lambda bi, hi: (bi, 0, hi, 0)),
        ],
        out_specs=pl.BlockSpec((None, max_disp, h_tile, w_pad),
                               lambda bi, hi: (bi, 0, hi, 0)),
        compiler_params=pltpu.CompilerParams(
            dimension_semantics=("parallel", "parallel"),
            vmem_limit_bytes=vmem_limit_bytes),
    )(left_feature, right_feature)

    if (w_pad != w) or (h_pad != h):
        out = out[:, :, :h, :w]
    return out


def cost_volume_correlation_ref(left, right, max_disp):
    """Pure-JAX reference mirroring the PyTorch forward (correlation branch)."""
    b, c, h, w = left.shape
    out = jnp.zeros((b, max_disp, h, w), left.dtype)
    for i in range(max_disp):
        if i > 0:
            corr = jnp.mean(left[:, :, :, i:] * right[:, :, :, :-i], axis=1)
            out = out.at[:, i, :, i:].set(corr)
        else:
            out = out.at[:, 0, :, :].set(jnp.mean(left * right, axis=1))
    return out


if __name__ == "__main__":
    # Small deterministic example consistent with the module's (b, c, h, w) input.
    b, c, h, w = 2, 4, 16, 16
    max_disp = 4

    key = jax.random.PRNGKey(0)
    k_left, k_right = jax.random.split(key)
    left_feature = jax.random.normal(k_left, (b, c, h, w), dtype=jnp.float32)
    right_feature = jax.random.normal(k_right, (b, c, h, w), dtype=jnp.float32)

    out = cost_volume_correlation(left_feature, right_feature, max_disp)
    out = jax.block_until_ready(out)

    ref = cost_volume_correlation_ref(left_feature, right_feature, max_disp)
    assert out.shape == (b, max_disp, h, w)
    assert jnp.allclose(out, ref, atol=1e-5, rtol=1e-5), "mismatch vs reference"

    print("KERNEL_OK")
</pallas_src>

<mosaic_0001>
module attributes {stable_mosaic.version = 11 : i64} {
  func.func @_correlation_cost_kernel(%arg0: i32, %arg1: i32, %arg2: memref<1x4x16x128xf32, #tpu.memory_space<vmem>>, %arg3: memref<1x4x16x128xf32, #tpu.memory_space<vmem>>, %arg4: memref<1x4x16x128xf32, #tpu.memory_space<vmem>>) attributes {dimension_semantics = [#tpu.dimension_semantics<parallel>, #tpu.dimension_semantics<parallel>], iteration_bounds = array<i64: 2, 1>, scalar_prefetch = 0 : i64, scratch_operands = 0 : i64, tpu.core_type = #tpu.core_type<tc>, window_params = [{transform_indices = @transform_0, window_bounds = array<i64: 1, 4, 16, 128>}, {transform_indices = @transform_1, window_bounds = array<i64: 1, 4, 16, 128>}, {transform_indices = @transform_2, window_bounds = array<i64: 1, 4, 16, 128>}]} {
    %0 = tpu.iota {dimensions = array<i32: 1>} : vector<16x128xi32>
    %cst = arith.constant 0.000000e+00 : f32
    %1 = vector.broadcast %cst : f32 to vector<16x128xf32>
    %cst_0 = arith.constant 0.000000e+00 : f32
    %2 = vector.broadcast %cst_0 : f32 to vector<16x128xf32>
    %cst_1 = arith.constant 0.000000e+00 : f32
    %3 = vector.broadcast %cst_1 : f32 to vector<16x128xf32>
    %cst_2 = arith.constant 0.000000e+00 : f32
    %4 = vector.broadcast %cst_2 : f32 to vector<16x128xf32>
    %c0 = arith.constant 0 : index
    %c0_3 = arith.constant 0 : index
    %c0_4 = arith.constant 0 : index
    %c0_5 = arith.constant 0 : index
    %5 = vector.load %arg2[%c0, %c0_3, %c0_4, %c0_5] : memref<1x4x16x128xf32, #tpu.memory_space<vmem>>, vector<1x4x16x128xf32>
    %6 = vector.shape_cast %5 : vector<1x4x16x128xf32> to vector<4x16x128xf32>
    %c0_6 = arith.constant 0 : index
    %c0_7 = arith.constant 0 : index
    %c0_8 = arith.constant 0 : index
    %c0_9 = arith.constant 0 : index
    %7 = vector.load %arg3[%c0_6, %c0_7, %c0_8, %c0_9] : memref<1x4x16x128xf32, #tpu.memory_space<vmem>>, vector<1x4x16x128xf32>
    %8 = vector.shape_cast %7 : vector<1x4x16x128xf32> to vector<4x16x128xf32>
    %9 = arith.mulf %6, %8 : vector<4x16x128xf32>
    %cst_10 = arith.constant dense<0.000000e+00> : vector<16x128xf32>
    %10 = vector.multi_reduction <add>, %9, %cst_10 [0] : vector<4x16x128xf32> to vector<16x128xf32>
    %11 = arith.addf %1, %10 : vector<16x128xf32>
    %c1_i32 = arith.constant 1 : i32
    %12 = tpu.dynamic_rotate %8 by %c1_i32 dim 2 : vector<4x16x128xf32>, i32 -> vector<4x16x128xf32>
    %13 = arith.mulf %6, %12 : vector<4x16x128xf32>
    %cst_11 = arith.constant dense<0.000000e+00> : vector<16x128xf32>
    %14 = vector.multi_reduction <add>, %13, %cst_11 [0] : vector<4x16x128xf32> to vector<16x128xf32>
    %15 = arith.addf %2, %14 : vector<16x128xf32>
    %c1_i32_12 = arith.constant 1 : i32
    %16 = tpu.dynamic_rotate %12 by %c1_i32_12 dim 2 : vector<4x16x128xf32>, i32 -> vector<4x16x128xf32>
    %17 = arith.mulf %6, %16 : vector<4x16x128xf32>
    %cst_13 = arith.constant dense<0.000000e+00> : vector<16x128xf32>
    %18 = vector.multi_reduction <add>, %17, %cst_13 [0] : vector<4x16x128xf32> to vector<16x128xf32>
    %19 = arith.addf %3, %18 : vector<16x128xf32>
    %c1_i32_14 = arith.constant 1 : i32
    %20 = tpu.dynamic_rotate %16 by %c1_i32_14 dim 2 : vector<4x16x128xf32>, i32 -> vector<4x16x128xf32>
    %21 = arith.mulf %6, %20 : vector<4x16x128xf32>
    %cst_15 = arith.constant dense<0.000000e+00> : vector<16x128xf32>
    %22 = vector.multi_reduction <add>, %21, %cst_15 [0] : vector<4x16x128xf32> to vector<16x128xf32>
    %23 = arith.addf %4, %22 : vector<16x128xf32>
    %c0_i32 = arith.constant 0 : i32
    %24 = vector.broadcast %c0_i32 : i32 to vector<16x128xi32>
    %25 = arith.cmpi sge, %0, %24 : vector<16x128xi32>
    %cst_16 = arith.constant 2.500000e-01 : f32
    %26 = vector.broadcast %cst_16 : f32 to vector<16x128xf32>
    %27 = arith.mulf %11, %26 : vector<16x128xf32>
    %cst_17 = arith.constant 0.000000e+00 : f32
    %28 = vector.broadcast %cst_17 : f32 to vector<16x128xf32>
    %29 = arith.select %25, %27, %28 : vector<16x128xi1>, vector<16x128xf32>
    %c0_18 = arith.constant 0 : index
    %c0_19 = arith.constant 0 : index
    %c0_20 = arith.constant 0 : index
    %c0_21 = arith.constant 0 : index
    %30 = vector.load %arg4[%c0_18, %c0_19, %c0_20, %c0_21] : memref<1x4x16x128xf32, #tpu.memory_space<vmem>>, vector<1x1x16x128xf32>
    %31 = vector.shape_cast %30 : vector<1x1x16x128xf32> to vector<16x128xf32>
    %32 = vector.shape_cast %29 : vector<16x128xf32> to vector<1x1x16x128xf32>
    tpu.vector_store %arg4[%c0_18, %c0_19, %c0_20, %c0_21], %32 {strides = array<i32>} : memref<1x4x16x128xf32, #tpu.memory_space<vmem>>, vector<1x1x16x128xf32>,
    %c1_i32_22 = arith.constant 1 : i32
    %33 = vector.broadcast %c1_i32_22 : i32 to vector<16x128xi32>
    %34 = arith.cmpi sge, %0, %33 : vector<16x128xi32>
    %cst_23 = arith.constant 2.500000e-01 : f32
    %35 = vector.broadcast %cst_23 : f32 to vector<16x128xf32>
    %36 = arith.mulf %15, %35 : vector<16x128xf32>
    %cst_24 = arith.constant 0.000000e+00 : f32
    %37 = vector.broadcast %cst_24 : f32 to vector<16x128xf32>
    %38 = arith.select %34, %36, %37 : vector<16x128xi1>, vector<16x128xf32>
    %c0_25 = arith.constant 0 : index
    %c1 = arith.constant 1 : index
    %c0_26 = arith.constant 0 : index
    %c0_27 = arith.constant 0 : index
    %39 = vector.load %arg4[%c0_25, %c1, %c0_26, %c0_27] : memref<1x4x16x128xf32, #tpu.memory_space<vmem>>, vector<1x1x16x128xf32>
    %40 = vector.shape_cast %39 : vector<1x1x16x128xf32> to vector<16x128xf32>
    %41 = vector.shape_cast %38 : vector<16x128xf32> to vector<1x1x16x128xf32>
    tpu.vector_store %arg4[%c0_25, %c1, %c0_26, %c0_27], %41 {strides = array<i32>} : memref<1x4x16x128xf32, #tpu.memory_space<vmem>>, vector<1x1x16x128xf32>,
    %c2_i32 = arith.constant 2 : i32
    %42 = vector.broadcast %c2_i32 : i32 to vector<16x128xi32>
    %43 = arith.cmpi sge, %0, %42 : vector<16x128xi32>
    %cst_28 = arith.constant 2.500000e-01 : f32
    %44 = vector.broadcast %cst_28 : f32 to vector<16x128xf32>
    %45 = arith.mulf %19, %44 : vector<16x128xf32>
    %cst_29 = arith.constant 0.000000e+00 : f32
    %46 = vector.broadcast %cst_29 : f32 to vector<16x128xf32>
    %47 = arith.select %43, %45, %46 : vector<16x128xi1>, vector<16x128xf32>
    %c0_30 = arith.constant 0 : index
    %c2 = arith.constant 2 : index
    %c0_31 = arith.constant 0 : index
    %c0_32 = arith.constant 0 : index
    %48 = vector.load %arg4[%c0_30, %c2, %c0_31, %c0_32] : memref<1x4x16x128xf32, #tpu.memory_space<vmem>>, vector<1x1x16x128xf32>
    %49 = vector.shape_cast %48 : vector<1x1x16x128xf32> to vector<16x128xf32>
    %50 = vector.shape_cast %47 : vector<16x128xf32> to vector<1x1x16x128xf32>
    tpu.vector_store %arg4[%c0_30, %c2, %c0_31, %c0_32], %50 {strides = array<i32>} : memref<1x4x16x128xf32, #tpu.memory_space<vmem>>, vector<1x1x16x128xf32>,
    %c3_i32 = arith.constant 3 : i32
    %51 = vector.broadcast %c3_i32 : i32 to vector<16x128xi32>
    %52 = arith.cmpi sge, %0, %51 : vector<16x128xi32>
    %cst_33 = arith.constant 2.500000e-01 : f32
    %53 = vector.broadcast %cst_33 : f32 to vector<16x128xf32>
    %54 = arith.mulf %23, %53 : vector<16x128xf32>
    %cst_34 = arith.constant 0.000000e+00 : f32
    %55 = vector.broadcast %cst_34 : f32 to vector<16x128xf32>
    %56 = arith.select %52, %54, %55 : vector<16x128xi1>, vector<16x128xf32>
    %c0_35 = arith.constant 0 : index
    %c3 = arith.constant 3 : index
    %c0_36 = arith.constant 0 : index
    %c0_37 = arith.constant 0 : index
    %57 = vector.load %arg4[%c0_35, %c3, %c0_36, %c0_37] : memref<1x4x16x128xf32, #tpu.memory_space<vmem>>, vector<1x1x16x128xf32>
    %58 = vector.shape_cast %57 : vector<1x1x16x128xf32> to vector<16x128xf32>
    %59 = vector.shape_cast %56 : vector<16x128xf32> to vector<1x1x16x128xf32>
    tpu.vector_store %arg4[%c0_35, %c3, %c0_36, %c0_37], %59 {strides = array<i32>} : memref<1x4x16x128xf32, #tpu.memory_space<vmem>>, vector<1x1x16x128xf32>,
    return
  }
  func.func @transform_0(%arg0: i32, %arg1: i32) -> (i32, i32, i32, i32) {
    %c0_i32 = arith.constant 0 : i32
    %c0_i32_0 = arith.constant 0 : i32
    %c0_i32_1 = arith.constant 0 : i32
    return %arg0, %c0_i32, %arg1, %c0_i32_0 : i32, i32, i32, i32
  }
  func.func @transform_1(%arg0: i32, %arg1: i32) -> (i32, i32, i32, i32) {
    %c0_i32 = arith.constant 0 : i32
    %c0_i32_0 = arith.constant 0 : i32
    %c0_i32_1 = arith.constant 0 : i32
    return %arg0, %c0_i32, %arg1, %c0_i32_0 : i32, i32, i32, i32
  }
  func.func @transform_2(%arg0: i32, %arg1: i32) -> (i32, i32, i32, i32) {
    %c0_i32 = arith.constant 0 : i32
    %c0_i32_0 = arith.constant 0 : i32
    %c0_i32_1 = arith.constant 0 : i32
    return %arg0, %c0_i32, %arg1, %c0_i32_0 : i32, i32, i32, i32
  }
}

</mosaic_0001>

<bundles_post_ra>
// kernel: tpu_custom_call.1
= control target key start
LH: loop header
LB: loop body
LE: loop exit
PB: predicated region body
PF: predicated region fallthrough
CT: control target
= control target key end

     0   :  { %7 = vsyncpa [#allocation3], 0  ;;  %s1039_s0 = inlined_call_operand.hbm [shape: f32[2,4,16,128], index: 0, kind: input, shape index: {}]   ;;  %s1040_s1 = inlined_call_operand.hbm [shape: f32[2,4,16,128], index: 1, kind: input, shape index: {}]   ;;  %s1041_s2 = inlined_call_operand.hbm [shape: f32[2,4,16,128], index: 2, kind: output, shape index: {}]  }
   0x1   :  { %9 = vsyncpa [#allocation3 + $0x1], 0 }
   0x2   :  { %10 = vsyncpa [#allocation6], 0 }
   0x3   :  { %12 = vsyncpa [#allocation6 + $0x1], 0 }
   0x4   :  { %13 = vsyncpa [#allocation4], 0 }
   0x5   :  { %15 = vsyncpa [#allocation4 + $0x1], 0  ;;  %s791_s9 = smov 0   ;;  %s793_s10 = smov 0  }
   0x6   :  { %s795_s11 = smov 0   ;;  %s797_s12 = smov 0  }
   0x7   :  { %s799_s13 = smov 0   ;;  %s801_s14 = smov 0  }
   0x8 LB: > { %s523_s15 = sadd.s32 4294967295, %s769_s14   ;;  %s524_s16 = sadd.s32 4294967294, %s769_s14   ;;  %s769_s14 = sphi %s801_s14, %s21_s14   ;;  %s765_s13 = sphi %s799_s13, %s1051_s13   ;;  %s761_s12 = sphi %s797_s12, %s1050_s12   ;;  %s757_s11 = sphi %s795_s11, %s1049_s11   ;;  %s753_s10 = sphi %s793_s10, %s1048_s10   ;;  %s749_s9 = sphi %s791_s9, %s1047_s9  }
   0x9   : > { %s33_s17 = sadd.s32 1, %s765_s13  ;;  %s42_s18 = sadd.s32 1, %s757_s11 }
   0xa   : > { %p35_p0 = scmp.ge.s32.totalorder %s33_s17, 2  ;;  %p49_p1 = scmp.ne.s32.totalorder %s757_s11, %s753_s10 }
   0xb   : > { %p50_p2 = scmp.eq.s32.totalorder %s769_s14, 0  ;;  %p55_p3 = scmp.ne.s32.totalorder %s753_s10, %s749_s9 }
   0xc   : > { %s1053_s17 = smov (%p35_p0, %s33_s17), 0  ;;  %p56_p5 = scmp.eq.s32.totalorder %s523_s15, 0 }
   0xd   : > { %p832_p4 = por %p50_p2, %p49_p1  ;;  %s37_s20 = ssub.s32 %s765_s13, %s1053_s17 }
   0xe   : > { %p109_p6 = scmp.eq.s32.totalorder %s523_s15, 1  ;;  %p40_p7 = scmp.eq.s32.totalorder %s37_s20, 0 }
   0xf   : > { %p838_p8 = por %p56_p5, %p55_p3  ;;  %p115_p10 = scmp.eq.s32.totalorder %s524_s16, 1 }
  0x10   : > { %p842_p9 = por %p109_p6, %p49_p1  ;;  %p526_p12 = scmp.ge.s32.totalorder %s769_s14, 2 }
  0x11   : > { %s847_s23 = scalar_select %p40_p7, %s757_s11, %s42_s18  }
  0x12   : > { %p849_p11 = por %p115_p10, %p55_p3  ;;  %p568_p13 = scmp.lt.s32.totalorder %s769_s14, 2 }
  0x13   : > { %s856_s25 = sand.u32 1, %s757_s11   ;;  %s548_s27 = sshll.u32 %s765_s13, 6 }
  0x14   : > { %s527_s26 = sshll.u32 %s856_s25, 6  ;;  %s146_s30 = scalar_lea.hbm %s1039_s0, %s548_s27 }
  0x15   : > { %s139_s3 = scalar_lea.vmem [#allocation2], %s527_s26  ;;  %s147_s5 = sshll.u32 %s146_s30, 4  ;;  %s148_s5 = int_to_ptr.hbm [resolvable:$true] %s147_s5 }
  0x16   : > { %s149_s4 = sshll.u32 %s139_s3, 4  ;;  %p865_p0 = pnand %p568_p13, %p832_p4  ;;  %s150_s4 = int_to_ptr.vmem [resolvable:$true] %s149_s4 }
  0x17   : > { %p533_p1 = scmp.ge.s32.totalorder %s769_s14, 1  ;;  %s136_s7 = scalar_lea.sflag [#allocation3], %s856_s25 }
  0x18   : > { %s771_s8 = smov 128   ;;  %s772_s15 = smov 8  }
  0x19   : > { %560 = dma.hbm_to_vmem [thread:$0]  (!%p865_p0), %s148_s5, 1024, %s150_s4, %s136_s7, %s771_s8, %s771_s8, %s772_s15  }
  0x1a   : > { %p181_p2 = scmp.lt.s32.totalorder %s769_s14, 3  ;;  %s170_s20 = scalar_lea.hbm %s1040_s1, %s548_s27 }
  0x1b   : > { %s171_s28 = sshll.u32 %s170_s20, 4  ;;  %s163_s19 = scalar_lea.vmem [#allocation5], %s527_s26  ;;  %s172_s28 = int_to_ptr.hbm [resolvable:$true] %s171_s28 }
  0x1c   : > { %p182_p3 = pnand %p533_p1, %p181_p2  ;;  %s173_s29 = sshll.u32 %s163_s19, 4  ;;  %s174_s29 = int_to_ptr.vmem [resolvable:$true] %s173_s29 }
  0x1d   : > { %s160_s30 = scalar_lea.sflag [#allocation6], %s856_s25  ;;  %s881_s3 = sand.u32 (!%p182_p3), 1, %s753_s10  }
  0x1e   : > { %563 = dma.hbm_to_vmem [thread:$0]  (!%p865_p0), %s172_s28, 1024, %s174_s29, %s160_s30, %s771_s8, %s771_s8, %s772_s15  }
  0x1f   : > { %185 = sbr.rel (%p182_p3) target bundleno = 406 (0x196), region = 28  ;;  %s884_s4 = sshll.u32 (!%p182_p3), %s881_s3, 6 }
  0x20   : > { %s188_s27 = scalar_lea.sflag (!%p182_p3), [#allocation3], %s881_s3  ;;  %s888_s5 = scalar_lea.vmem (!%p182_p3), [#allocation2], %s884_s4 }
  0x24   : > { %736 = dma.done.wait (%p838_p8), %s188_s27, 1024  }
  0x25   : > { %738 = vsyncadd (%p838_p8), %s188_s27, 4294966272  ;;  %s198_s25 = scalar_lea.sflag [#allocation6], %s881_s3  ;;  %s201_s26 = scalar_lea.vmem [#allocation5], %s884_s4 }
  0x26   : > { %740 = dma.done.wait (%p838_p8), %s198_s25, 1024  }
  0x27   : > { %742 = vsyncadd (%p838_p8), %s198_s25, 4294966272  ;;  %v243_v0 = vld [vmem:[%s201_s26 + $0x10] sm:$0xff]  ;;  %v241_v2 = vld [vmem:[%s201_s26] sm:$0xff]  ;;  %s773_s6 = smov 1   ;;  %s938_s21 = scalar_lea.vmem [#allocation7], %s884_s4  ;;  %v231_v42 = vlaneseq }
  0x28   : > { %v901_v1 = vld [vmem:[%s888_s5 + $0x10] sm:$0xff]  ;;  %269 = vrot.lane.b32.xlu1 %v243_v0, %s773_s6  ;;  %265 = vrot.lane.b32.xlu0 %v241_v2, %s773_s6  ;;  %v907_v4 = vld [vmem:[%s888_s5] sm:$0xff]  ;;  %s550_s7 = sshll.u32 %s761_s12, 6  ;;  %s407_s12 = sshll.u32 %s938_s21, 4  ;;  %s408_s12 = int_to_ptr.vmem [resolvable:$true] %s407_s12 }
  0x29   : > { %v251_v3 = vmul.f32 %v243_v0, %v901_v1  ;;  %v244_v5 = vld [vmem:[%s201_s26 + $0x18] sm:$0xff]  ;;  %v249_v6 = vmul.f32 %v241_v2, %v907_v4  ;;  %v242_v8 = vld [vmem:[%s201_s26 + $0x8] sm:$0xff]  ;;  %v247_v13 = vld [vmem:[%s201_s26 + $0x30] sm:$0xff]  ;;  %v956_v47 = vand.u32 127, %v231_v42  ;;  %s406_s16 = scalar_lea.hbm %s1041_s2, %s550_s7  ;;  %s393_s20 = scalar_lea.sflag [#allocation4], %s881_s3 }
  0x2a   : > { %v911_v7 = vld [vmem:[%s888_s5 + $0x18] sm:$0xff]  ;;  %v914_v9 = vld [vmem:[%s888_s5 + $0x8] sm:$0xff]  ;;  %v919_v15 = vld [vmem:[%s888_s5 + $0x30] sm:$0xff]  ;;  %s409_s18 = sshll.u32 %s406_s16, 4  ;;  %s703_s4 = scalar_lea.hbm %s1041_s2, 128  ;;  %s410_s18 = int_to_ptr.hbm [resolvable:$true] %s409_s18 }
  0x2b   : > { %v252_v10 = vmul.f32 %v244_v5, %v911_v7  ;;  %v250_v11 = vmul.f32 %v242_v8, %v914_v9  ;;  %v248_v12 = vld [vmem:[%s201_s26 + $0x38] sm:$0xff]  ;;  %v257_v14 = vadd.f32 %v251_v3, %v249_v6  ;;  %v245_v16 = vld [vmem:[%s201_s26 + $0x20] sm:$0xff]  ;;  %v255_v20 = vmul.f32 %v247_v13, %v919_v15  ;;  %v246_v22 = vld [vmem:[%s201_s26 + $0x28] sm:$0xff]  ;;  %s697_s28 = sshra.s32 %s410_s18, 4  ;;  %s698_s28 = int_to_ptr.hbm [resolvable:$true] %s697_s28 }
  0x2c   : > { %v922_v17 = vld [vmem:[%s888_s5 + $0x20] sm:$0xff]  ;;  %v925_v19 = vld [vmem:[%s888_s5 + $0x38] sm:$0xff]  ;;  %273 = vrot.lane.b32.xlu2 %v245_v16, %s773_s6  ;;  %v931_v23 = vld [vmem:[%s888_s5 + $0x28] sm:$0xff]  ;;  %vm368_vm0 = vcmp.ge.s32.totalorder %v956_v47, 1  ;;  %vm376_vm1 = vcmp.ge.s32.totalorder %v956_v47, 2  ;;  %vm384_vm2 = vcmp.ge.s32.totalorder %v956_v47, 3  ;;  %p704_p7 = scmp.lt.s32.totalorder %s698_s28, %s1041_s2 }
  0x2d   : > { %v260_v18 = vadd.f32 %v252_v10, %v250_v11  ;;  %v253_v21 = vmul.f32 %v245_v16, %v922_v17  ;;  %v256_v24 = vmul.f32 %v248_v12, %v925_v19  ;;  %v254_v25 = vmul.f32 %v246_v22, %v931_v23  ;;  %s699_s19 = scalar_lea.hbm %s698_s28, 64 }
  0x2e   : > { %p700_p4 = scmp.ne.s32.totalorder %s698_s28, %s699_s19  ;;  %p705_p8 = scmp.lt.s32.totalorder %s703_s4, %s699_s19 }
  0x2f   : > { %v258_v26 = vadd.f32 %v257_v14, %v253_v21  ;;  %v261_v27 = vadd.f32 %v260_v18, %v254_v25 }
  0x30   : > { %271 = vrot.lane.b32.xlu1 %v244_v5, %s773_s6  ;;  %267 = vrot.lane.b32.xlu0 %v242_v8, %s773_s6  ;;  %p701_p5 = pnand %p700_p4, %p842_p9  ;;  %p706_p10 = por %p705_p8, %p704_p7 }
  0x31   : > { %v259_v28 = vadd.f32 %v258_v26, %v255_v20  ;;  %v262_v29 = vadd.f32 %v261_v27, %v256_v24 }
  0x32   : > { %p702_p6 = pneg %p701_p5 }
  0x33   : > { %v362_v30 = vmul.f32 0.25, %v259_v28  ;;  %v363_v31 = vmul.f32 0.25, %v262_v29 }
  0x34   : > { %275 = vrot.lane.b32.xlu2 %v246_v22, %s773_s6  ;;  %p707_p13 = pnand %p706_p10, %p702_p6 }
  0x35   : > { %366 = vst [vmem:[%s938_s21] sm:$0xff] %v362_v30 }
  0x36   : > { %367 = vst [vmem:[%s938_s21 + $0x8] sm:$0xff] %v363_v31 }
  0x38   : > { %279 = vrot.lane.b32.xlu1 %v248_v12, %s773_s6  ;;  %277 = vrot.lane.b32.xlu0 %v247_v13, %s773_s6 }
  0x86   : > { %v274_v32 = vpop.permute.xlu2 %273 }
  0x87   : > { %v285_v45 = vmul.f32 %v274_v32, %v922_v17 }
  0x8e   : > { %v276_v35 = vpop.permute.xlu2 %275 }
  0x8f   : > { %v286_v46 = vmul.f32 %v276_v35, %v931_v23 }
  0x9a   : > { %v270_v33 = vpop.permute.xlu1 %269  ;;  %v266_v34 = vpop.permute.xlu0 %265 }
  0x9b   : > { %301 = vrot.lane.b32.xlu1 %v270_v33, %s773_s6  ;;  %297 = vrot.lane.b32.xlu2 %v266_v34, %s773_s6  ;;  %v283_v36 = vmul.f32 %v270_v33, %v901_v1  ;;  %v281_v39 = vmul.f32 %v266_v34, %v907_v4 }
  0x9d   : > { %v289_v43 = vadd.f32 %v283_v36, %v281_v39 }
  0x9f   : > { %v290_v53 = vadd.f32 %v289_v43, %v285_v45 }
  0xa2   : > { %v272_v37 = vpop.permute.xlu1 %271  ;;  %v268_v38 = vpop.permute.xlu0 %267 }
  0xa3   : > { %v284_v40 = vmul.f32 %v272_v37, %v911_v7  ;;  %v282_v41 = vmul.f32 %v268_v38, %v914_v9  ;;  %307 = vrot.lane.b32.xlu1 %v276_v35, %s773_s6  ;;  %299 = vrot.lane.b32.xlu0 %v268_v38, %s773_s6 }
  0xa4   : > { %303 = vrot.lane.b32.xlu2 %v272_v37, %s773_s6 }
  0xa5   : > { %v292_v44 = vadd.f32 %v284_v40, %v282_v41 }
  0xa7   : > { %v293_v51 = vadd.f32 %v292_v44, %v286_v46 }
  0xaa   : > { %v280_v48 = vpop.permute.xlu1 %279  ;;  %v278_v49 = vpop.permute.xlu0 %277 }
  0xab   : > { %v288_v50 = vmul.f32 %v280_v48, %v925_v19  ;;  %v287_v52 = vmul.f32 %v278_v49, %v919_v15  ;;  %305 = vrot.lane.b32.xlu0 %v274_v32, %s773_s6 }
  0xac   : > { %309 = vrot.lane.b32.xlu2 %v278_v49, %s773_s6 }
  0xad   : > { %v294_v54 = vadd.f32 %v293_v51, %v288_v50  ;;  %v291_v55 = vadd.f32 %v290_v53, %v287_v52 }
  0xaf   : > { %v370_v56 = vmul.f32 0.25, %v294_v54  ;;  %v369_v57 = vmul.f32 0.25, %v291_v55 }
  0xb1   : > { %v372_v58 = vsel %vm368_vm0, %v370_v56, 0.0  ;;  %v371_v59 = vsel %vm368_vm0, %v369_v57, 0.0 }
  0xb2   : > { %538 = vst [vmem:[%s938_s21 + $0x18] sm:$0xff] %v372_v58 }
  0xb3   : > { %537 = vst [vmem:[%s938_s21 + $0x10] sm:$0xff] %v371_v59  ;;  %311 = vrot.lane.b32.xlu0 %v280_v48, %s773_s6 }
  0xf5   : > { %v298_v60 = vpop.permute.xlu2 %297 }
  0xf6   : > { %329 = vrot.lane.b32.xlu1 %v298_v60, %s773_s6  ;;  %v313_v5 = vmul.f32 %v298_v60, %v907_v4 }
  0xfe   : > { %v304_v61 = vpop.permute.xlu2 %303 }
  0xff   : > { %335 = vrot.lane.b32.xlu1 %v304_v61, %s773_s6  ;;  %v316_v12 = vmul.f32 %v304_v61, %v911_v7 }
 0x106   : > { %v310_v62 = vpop.permute.xlu2 %309 }
 0x107   : > { %341 = vrot.lane.b32.xlu1 %v310_v62, %s773_s6  ;;  %v319_v13 = vmul.f32 %v310_v62, %v919_v15 }
 0x10d   : > { %v302_v63 = vpop.permute.xlu1 %301 }
 0x10e   : > { %333 = vrot.lane.b32.xlu0 %v302_v63, %s773_s6  ;;  %v315_v3 = vmul.f32 %v302_v63, %v901_v1 }
 0x110   : > { %v321_v8 = vadd.f32 %v315_v3, %v313_v5 }
 0x115   : > { %v308_v0 = vpop.permute.xlu1 %307  ;;  %v300_v2 = vpop.permute.xlu0 %299 }
 0x116   : > { %339 = vrot.lane.b32.xlu0 %v308_v0, %s773_s6  ;;  %331 = vrot.lane.b32.xlu2 %v300_v2, %s773_s6  ;;  %v314_v10 = vmul.f32 %v300_v2, %v914_v9  ;;  %v318_v20 = vmul.f32 %v308_v0, %v931_v23 }
 0x118   : > { %v324_v16 = vadd.f32 %v316_v12, %v314_v10 }
 0x11a   : > { %v325_v25 = vadd.f32 %v324_v16, %v318_v20 }
 0x11d   : > { %v306_v6 = vpop.permute.xlu0 %305 }
 0x11e   : > { %v317_v11 = vmul.f32 %v306_v6, %v922_v17  ;;  %337 = vrot.lane.b32.xlu2 %v306_v6, %s773_s6 }
 0x120   : > { %v322_v14 = vadd.f32 %v321_v8, %v317_v11 }
 0x122   : > { %v323_v18 = vadd.f32 %v322_v14, %v319_v13 }
 0x124   : > { %v377_v21 = vmul.f32 0.25, %v323_v18 }
 0x125   : > { %v312_v22 = vpop.permute.xlu0 %311 }
 0x126   : > { %v320_v24 = vmul.f32 %v312_v22, %v925_v19  ;;  %v379_v26 = vsel %vm376_vm1, %v377_v21, 0.0  ;;  %343 = vrot.lane.b32.xlu2 %v312_v22, %s773_s6 }
 0x127   : > { %539 = vst [vmem:[%s938_s21 + $0x20] sm:$0xff] %v379_v26 }
 0x128   : > { %v326_v27 = vadd.f32 %v325_v25, %v320_v24 }
 0x12a   : > { %v378_v28 = vmul.f32 0.25, %v326_v27 }
 0x12c   : > { %v380_v29 = vsel %vm376_vm1, %v378_v28, 0.0 }
 0x12d   : > { %540 = vst [vmem:[%s938_s21 + $0x28] sm:$0xff] %v380_v29 }
 0x168   : > { %v330_v30 = vpop.permute.xlu1 %329 }
 0x169   : > { %v345_v36 = vmul.f32 %v330_v30, %v907_v4 }
 0x170   : > { %v332_v31 = vpop.permute.xlu2 %331 }
 0x171   : > { %v336_v32 = vpop.permute.xlu1 %335  ;;  %v346_v41 = vmul.f32 %v332_v31, %v914_v9 }
 0x172   : > { %v348_v42 = vmul.f32 %v336_v32, %v911_v7 }
 0x178   : > { %v338_v33 = vpop.permute.xlu2 %337 }
 0x179   : > { %v342_v35 = vpop.permute.xlu1 %341  ;;  %v349_v38 = vmul.f32 %v338_v33, %v922_v17 }
 0x17a   : > { %v351_v40 = vmul.f32 %v342_v35, %v919_v15 }
 0x180   : > { %v334_v34 = vpop.permute.xlu0 %333  ;;  %v344_v44 = vpop.permute.xlu2 %343 }
 0x181   : > { %v347_v37 = vmul.f32 %v334_v34, %v901_v1  ;;  %v356_v1 = vadd.f32 %v348_v42, %v346_v41  ;;  %v352_v15 = vmul.f32 %v344_v44, %v925_v19 }
 0x183   : > { %v353_v39 = vadd.f32 %v347_v37, %v345_v36 }
 0x185   : > { %v354_v43 = vadd.f32 %v353_v39, %v349_v38 }
 0x187   : > { %v355_v45 = vadd.f32 %v354_v43, %v351_v40 }
 0x188   : > { %v340_v4 = vpop.permute.xlu0 %339 }
 0x189   : > { %v385_v17 = vmul.f32 0.25, %v355_v45  ;;  %v350_v46 = vmul.f32 %v340_v4, %v931_v23 }
 0x18b   : > { %v387_v7 = vsel %vm384_vm2, %v385_v17, 0.0  ;;  %v357_v9 = vadd.f32 %v356_v1, %v350_v46 }
 0x18c   : > { %541 = vst [vmem:[%s938_s21 + $0x30] sm:$0xff] %v387_v7 }
 0x18d   : > { %v358_v48 = vadd.f32 %v357_v9, %v352_v15 }
 0x18f   : > { %v386_v49 = vmul.f32 0.25, %v358_v48 }
 0x191   : > { %v388_v23 = vsel %vm384_vm2, %v386_v49, 0.0 }
 0x192   : > { %542 = vst [vmem:[%s938_s21 + $0x38] sm:$0xff] %v388_v23 }
 0x193   : > { %710 = shalt.err (!%p707_p13)
}
 0x194   : > { %s774_s3 = smov 128   ;;  %s775_s25 = smov 8  }
 0x195   : > { %555 = dma.vmem_to_hbm [thread:$0]  (%p842_p9), %s408_s12, 1024, %s410_s18, %s393_s20, %s774_s3, %s774_s3, %s775_s25  }
 0x196 PF: > { %s424_s26 = sand.u32 1, %s749_s9   ;;  %p565_p0 = pnand %p526_p12, %p849_p11 }
 0x197   : > { %s425_s6 = scalar_lea.sflag [#allocation4], %s424_s26 }
 0x198   : > { %p566_p1 = pneg %p565_p0 }
 0x19a   : > { %744 = dma.done.wait (%p566_p1), %s425_s6, 1024  }
 0x19b   : > { %746 = vsyncadd (%p566_p1), %s425_s6, 4294966272  ;;  %s21_s14 = sadd.s32 1, %s769_s14   ;;  %s1047_s9 = smov %s753_s10 }
 0x19c   : > { %p18_p2 = scmp.ge.s32.totalorder %s21_s14, 4   ;;  %s1048_s10 = smov %s757_s11 }
 0x19d   : > { %s1049_s11 = smov %s847_s23  ;;  %s1050_s12 = smov %s765_s13 }
 0x19e   : > { %s1051_s13 = smov %s1053_s17  ;;  %20 = sbr.rel (!%p18_p2) target bundleno = 8 (0x8), region = 89 }
 0x1a3   :  { %431 = vsyncpa [#allocation3], 1 }
 0x1a4   :  { %433 = vsyncpa [#allocation3 + $0x1], 1 }
 0x1a5   :  { %434 = vsyncpa [#allocation6], 1 }
 0x1a6   :  { %436 = vsyncpa [#allocation6 + $0x1], 1 }
 0x1a7   :  { %437 = vsyncpa [#allocation4], 1 }
 0x1a8   :  { %439 = vsyncpa [#allocation4 + $0x1], 1 }

</bundles_post_ra>
